<compile_context>
chip_gen: v7x
topology: tpu7x:2x2x1
jax: 0.10.0
libtpu: 0.0.40
codegen_flags: <defaults>
</compile_context>

<pallas_src>
import jax
import jax.numpy as jnp
from jax.experimental import pallas as pl
from jax.experimental.pallas import tpu as pltpu

BN_EPS = 1e-5
LEAKY_SLOPE = 0.2


def _pz_y_kernel(y_ref, w1_ref, b1_ref, gamma_ref, beta_ref,
                 wh_ref, bh_ref, eps_ref, out_ref):
    """Fused Linear -> BatchNorm1d(train) -> LeakyReLU -> fused [mean|logvar] head -> reparameterize.

    y_ref   : (B, dim_y)      bf16
    w1_ref  : (dim_y, H)      bf16
    b1/gamma/beta : (1, H)    f32
    wh_ref  : (H, 2*dim_z)    bf16   (wmu | wvar concatenated)
    bh_ref  : (1, 2*dim_z)    f32
    eps_ref : (B, dim_z)      f32
    out_ref : (B, 3*dim_z)    f32    lane-dense slab [ z | mean | logvar ]
    """
    dim_z = eps_ref.shape[-1]

    # ---- fc: Linear(dim_y, H) on the MXU (bf16 inputs, f32 accumulation) ----
    h = jnp.dot(y_ref[...], w1_ref[...],
                preferred_element_type=jnp.float32) + b1_ref[...]

    # ---- BatchNorm1d(H), training mode (biased batch stats), one pass + scale/shift ----
    inv_b = 1.0 / h.shape[0]
    mu = jnp.sum(h, axis=0, keepdims=True) * inv_b
    ex2 = jnp.sum(h * h, axis=0, keepdims=True) * inv_b
    var = jnp.maximum(ex2 - mu * mu, 0.0)
    scale = gamma_ref[...] * jax.lax.rsqrt(var + BN_EPS)
    shift = beta_ref[...] - mu * scale
    h = h * scale + shift

    # ---- LeakyReLU(0.2), f32 VPU math (no bf16 elementwise, v5e-safe) ----
    h = jnp.where(h > 0, h, LEAKY_SLOPE * h)

    # ---- fused Gaussian heads: one wide matmul -> [mean | logvar] ----
    ml = jnp.dot(h.astype(jnp.bfloat16), wh_ref[...],
                 preferred_element_type=jnp.float32) + bh_ref[...]
    mean = ml[:, :dim_z]
    logvar = ml[:, dim_z:]

    # ---- reparameterize: z = mean + eps * exp(0.5 * logvar) ----
    z = mean + eps_ref[...] * jnp.exp(0.5 * logvar)

    # single lane-dense output slab: [ z | mean | logvar ]
    out_ref[...] = jnp.concatenate([z, ml], axis=-1)


def pz_y_forward(y, params, eps):
    """y: (B, dim_y) f32; eps: (B, dim_z) f32 standard-normal noise. Returns (z, mean, logvar)."""
    B, dim_y = y.shape
    hidden = params["w1"].shape[1]
    dim_z = params["wmu"].shape[1]

    # fuse the two heads into one wide (H, 2*dim_z) weight / (1, 2*dim_z) bias
    wh = jnp.concatenate([params["wmu"], params["wvar"]], axis=1)
    bh = jnp.concatenate([params["bmu"], params["bvar"]], axis=1)

    # bf16 MXU inputs; accumulation and all elementwise math stay f32 inside the kernel
    y_bf = y.astype(jnp.bfloat16)
    w1_bf = params["w1"].astype(jnp.bfloat16)
    wh_bf = wh.astype(jnp.bfloat16)

    vmem = pl.BlockSpec(memory_space=pltpu.MemorySpace.VMEM)
    out_sds = jax.ShapeDtypeStruct((B, 3 * dim_z), jnp.float32)

    flops = 2 * B * dim_y * hidden + 2 * B * hidden * (2 * dim_z) + 10 * B * hidden
    bytes_accessed = (
        y_bf.size * 2 + w1_bf.size * 2 + wh_bf.size * 2
        + (params["b1"].size + params["gamma"].size + params["beta"].size
           + bh.size + eps.size) * 4
        + B * 3 * dim_z * 4
    )

    slab = pl.pallas_call(
        _pz_y_kernel,
        out_shape=out_sds,
        in_specs=[vmem] * 8,
        out_specs=vmem,
        compiler_params=pltpu.CompilerParams(vmem_limit_bytes=48 * 1024 * 1024),
        cost_estimate=pl.CostEstimate(
            flops=flops,
            transcendentals=B * dim_z + hidden,
            bytes_accessed=bytes_accessed,
        ),
    )(y_bf, w1_bf, params["b1"], params["gamma"], params["beta"], wh_bf, bh, eps)

    z = slab[:, :dim_z]
    mean = slab[:, dim_z:2 * dim_z]
    logvar = slab[:, 2 * dim_z:]
    return z, mean, logvar


def init_params(key, dim_y, dim_z, hidden=1024):
    ks = jax.random.split(key, 6)
    scale = 0.02
    return {
        # Linear weights stored pre-transposed as (in, out)
        "w1":    scale * jax.random.normal(ks[0], (dim_y, hidden), jnp.float32),
        "b1":    scale * jax.random.normal(ks[1], (1, hidden), jnp.float32),
        "gamma": jnp.ones((1, hidden), jnp.float32),
        "beta":  jnp.zeros((1, hidden), jnp.float32),
        "wmu":   scale * jax.random.normal(ks[2], (hidden, dim_z), jnp.float32),
        "bmu":   scale * jax.random.normal(ks[3], (1, dim_z), jnp.float32),
        "wvar":  scale * jax.random.normal(ks[4], (hidden, dim_z), jnp.float32),
        "bvar":  scale * jax.random.normal(ks[5], (1, dim_z), jnp.float32),
    }


def _reference(y, params, eps):
    # pure f32 JAX reference (PyTorch training-mode semantics)
    h = y @ params["w1"] + params["b1"]
    mu_b = h.mean(axis=0, keepdims=True)
    var_b = ((h - mu_b) ** 2).mean(axis=0, keepdims=True)
    h = (h - mu_b) / jnp.sqrt(var_b + BN_EPS) * params["gamma"] + params["beta"]
    h = jnp.where(h > 0, h, LEAKY_SLOPE * h)
    mean = h @ params["wmu"] + params["bmu"]
    logvar = h @ params["wvar"] + params["bvar"]
    z = mean + eps * jnp.exp(0.5 * logvar)
    return z, mean, logvar


if __name__ == "__main__":
    B, dim_y, dim_z = 8, 32, 16

    key = jax.random.PRNGKey(0)
    k_y, k_p, k_eps = jax.random.split(key, 3)

    y = jax.random.normal(k_y, (B, dim_y), jnp.float32)
    params = init_params(k_p, dim_y, dim_z)
    # torch.randn_like(mean) noise is generated host-side and passed into the kernel
    eps = jax.random.normal(k_eps, (B, dim_z), jnp.float32)

    z, mean, logvar = jax.block_until_ready(pz_y_forward(y, params, eps))

    # sanity check against the pure-f32 JAX reference (kernel uses bf16 MXU inputs,
    # so tolerances are slightly loosened)
    z_r, m_r, lv_r = _reference(y, params, eps)
    assert z.shape == (B, dim_z) and mean.shape == (B, dim_z) and logvar.shape == (B, dim_z)
    assert jnp.allclose(mean, m_r, atol=2e-2, rtol=2e-2)
    assert jnp.allclose(logvar, lv_r, atol=2e-2, rtol=2e-2)
    assert jnp.allclose(z, z_r, atol=3e-2, rtol=3e-2)

    print("KERNEL_OK")
</pallas_src>

<mosaic_0001>
module attributes {stable_mosaic.version = 11 : i64} {
  func.func @_pz_y_kernel(%arg0: memref<8x32xbf16, #tpu.memory_space<vmem>>, %arg1: memref<32x1024xbf16, #tpu.memory_space<vmem>>, %arg2: memref<1x1024xf32, #tpu.memory_space<vmem>>, %arg3: memref<1x1024xf32, #tpu.memory_space<vmem>>, %arg4: memref<1x1024xf32, #tpu.memory_space<vmem>>, %arg5: memref<1024x32xbf16, #tpu.memory_space<vmem>>, %arg6: memref<1x32xf32, #tpu.memory_space<vmem>>, %arg7: memref<8x16xf32, #tpu.memory_space<vmem>>, %arg8: memref<8x48xf32, #tpu.memory_space<vmem>>) attributes {dimension_semantics = [], scalar_prefetch = 0 : i64, scratch_operands = 0 : i64, tpu.core_type = #tpu.core_type<tc>} {
    %c0 = arith.constant 0 : index
    %c0_0 = arith.constant 0 : index
    %0 = vector.load %arg0[%c0, %c0_0] : memref<8x32xbf16, #tpu.memory_space<vmem>>, vector<8x32xbf16>
    %c0_1 = arith.constant 0 : index
    %c0_2 = arith.constant 0 : index
    %1 = vector.load %arg1[%c0_1, %c0_2] : memref<32x1024xbf16, #tpu.memory_space<vmem>>, vector<32x1024xbf16>
    %cst = arith.constant dense<0.000000e+00> : vector<8x1024xf32>
    %2 = tpu.matmul %0, %1, %cst {dimension_numbers = #tpu.dot_dimension_numbers<[1], [0], [0], [1], [0, 0, 1, 1], [], []>} : vector<8x32xbf16>, vector<32x1024xbf16>, vector<8x1024xf32> -> vector<8x1024xf32>
    %c0_3 = arith.constant 0 : index
    %c0_4 = arith.constant 0 : index
    %3 = vector.load %arg2[%c0_3, %c0_4] : memref<1x1024xf32, #tpu.memory_space<vmem>>, vector<1x1024xf32>
    %4 = vector.broadcast %3 : vector<1x1024xf32> to vector<8x1024xf32>
    %5 = arith.addf %2, %4 : vector<8x1024xf32>
    %cst_5 = arith.constant dense<0.000000e+00> : vector<1024xf32>
    %6 = vector.multi_reduction <add>, %5, %cst_5 [0] : vector<8x1024xf32> to vector<1024xf32>
    %7 = vector.shape_cast %6 : vector<1024xf32> to vector<1x1024xf32>
    %cst_6 = arith.constant 1.250000e-01 : f32
    %8 = vector.broadcast %cst_6 : f32 to vector<1x1024xf32>
    %9 = arith.mulf %7, %8 : vector<1x1024xf32>
    %10 = arith.mulf %5, %5 : vector<8x1024xf32>
    %cst_7 = arith.constant dense<0.000000e+00> : vector<1024xf32>
    %11 = vector.multi_reduction <add>, %10, %cst_7 [0] : vector<8x1024xf32> to vector<1024xf32>
    %12 = vector.shape_cast %11 : vector<1024xf32> to vector<1x1024xf32>
    %cst_8 = arith.constant 1.250000e-01 : f32
    %13 = vector.broadcast %cst_8 : f32 to vector<1x1024xf32>
    %14 = arith.mulf %12, %13 : vector<1x1024xf32>
    %15 = arith.mulf %9, %9 : vector<1x1024xf32>
    %16 = arith.subf %14, %15 : vector<1x1024xf32>
    %cst_9 = arith.constant 0.000000e+00 : f32
    %17 = vector.broadcast %cst_9 : f32 to vector<1x1024xf32>
    %18 = arith.maximumf %16, %17 : vector<1x1024xf32>
    %c0_10 = arith.constant 0 : index
    %c0_11 = arith.constant 0 : index
    %19 = vector.load %arg3[%c0_10, %c0_11] : memref<1x1024xf32, #tpu.memory_space<vmem>>, vector<1x1024xf32>
    %cst_12 = arith.constant 9.99999974E-6 : f32
    %20 = vector.broadcast %cst_12 : f32 to vector<1x1024xf32>
    %21 = arith.addf %18, %20 : vector<1x1024xf32>
    %22 = math.rsqrt %21 : vector<1x1024xf32>
    %23 = arith.mulf %19, %22 : vector<1x1024xf32>
    %c0_13 = arith.constant 0 : index
    %c0_14 = arith.constant 0 : index
    %24 = vector.load %arg4[%c0_13, %c0_14] : memref<1x1024xf32, #tpu.memory_space<vmem>>, vector<1x1024xf32>
    %25 = arith.mulf %9, %23 : vector<1x1024xf32>
    %26 = arith.subf %24, %25 : vector<1x1024xf32>
    %27 = vector.broadcast %23 : vector<1x1024xf32> to vector<8x1024xf32>
    %28 = arith.mulf %5, %27 : vector<8x1024xf32>
    %29 = vector.broadcast %26 : vector<1x1024xf32> to vector<8x1024xf32>
    %30 = arith.addf %28, %29 : vector<8x1024xf32>
    %cst_15 = arith.constant 0.000000e+00 : f32
    %31 = vector.broadcast %cst_15 : f32 to vector<8x1024xf32>
    %32 = arith.cmpf ogt, %30, %31 : vector<8x1024xf32>
    %cst_16 = arith.constant 2.000000e-01 : f32
    %33 = vector.broadcast %cst_16 : f32 to vector<8x1024xf32>
    %34 = arith.mulf %33, %30 : vector<8x1024xf32>
    %35 = arith.select %32, %30, %34 : vector<8x1024xi1>, vector<8x1024xf32>
    %36 = arith.truncf %35 : vector<8x1024xf32> to vector<8x1024xbf16>
    %c0_17 = arith.constant 0 : index
    %c0_18 = arith.constant 0 : index
    %37 = vector.load %arg5[%c0_17, %c0_18] : memref<1024x32xbf16, #tpu.memory_space<vmem>>, vector<1024x32xbf16>
    %cst_19 = arith.constant dense<0.000000e+00> : vector<8x32xf32>
    %38 = tpu.matmul %36, %37, %cst_19 {dimension_numbers = #tpu.dot_dimension_numbers<[1], [0], [0], [1], [0, 0, 1, 1], [], []>} : vector<8x1024xbf16>, vector<1024x32xbf16>, vector<8x32xf32> -> vector<8x32xf32>
    %c0_20 = arith.constant 0 : index
    %c0_21 = arith.constant 0 : index
    %39 = vector.load %arg6[%c0_20, %c0_21] : memref<1x32xf32, #tpu.memory_space<vmem>>, vector<1x32xf32>
    %40 = vector.broadcast %39 : vector<1x32xf32> to vector<8x32xf32>
    %41 = arith.addf %38, %40 : vector<8x32xf32>
    %42 = vector.extract_strided_slice %41 {offsets = [0, 0], sizes = [8, 16], strides = [1, 1]} : vector<8x32xf32> to vector<8x16xf32>
    %43 = vector.extract_strided_slice %41 {offsets = [0, 16], sizes = [8, 16], strides = [1, 1]} : vector<8x32xf32> to vector<8x16xf32>
    %c0_22 = arith.constant 0 : index
    %c0_23 = arith.constant 0 : index
    %44 = vector.load %arg7[%c0_22, %c0_23] : memref<8x16xf32, #tpu.memory_space<vmem>>, vector<8x16xf32>
    %cst_24 = arith.constant 5.000000e-01 : f32
    %45 = vector.broadcast %cst_24 : f32 to vector<8x16xf32>
    %46 = arith.mulf %45, %43 : vector<8x16xf32>
    %47 = math.exp %46 : vector<8x16xf32>
    %48 = arith.mulf %44, %47 : vector<8x16xf32>
    %49 = arith.addf %42, %48 : vector<8x16xf32>
    %50 = tpu.concatenate %49, %41 in 1 : vector<8x16xf32>, vector<8x32xf32> -> vector<8x48xf32>
    %c0_25 = arith.constant 0 : index
    %c0_26 = arith.constant 0 : index
    %51 = vector.load %arg8[%c0_25, %c0_26] : memref<8x48xf32, #tpu.memory_space<vmem>>, vector<8x48xf32>
    tpu.vector_store %arg8[%c0_25, %c0_26], %50 {strides = array<i32>} : memref<8x48xf32, #tpu.memory_space<vmem>>, vector<8x48xf32>,
    return
  }
}

</mosaic_0001>

<bundles_post_ra>
// kernel: tpu_custom_call.1
= control target key start
LH: loop header
LB: loop body
LE: loop exit
PB: predicated region body
PF: predicated region fallthrough
CT: control target
= control target key end

     0   :  { %v1751_v8 = vmov 0   ;;  %vm170_vm0 = vcmask 261120   ;;  %s2266_s0 = inlined_call_operand.vmem [shape: bf16[8,32], index: 0, kind: input, shape index: {}]   ;;  %s2267_s1 = inlined_call_operand.vmem [shape: bf16[32,1024], index: 1, kind: input, shape index: {}]   ;;  %s2268_s2 = inlined_call_operand.vmem [shape: f32[1,1024], index: 2, kind: input, shape index: {}]   ;;  %s2269_s3 = inlined_call_operand.vmem [shape: f32[1,1024], index: 3, kind: input, shape index: {}]   ;;  %s2270_s4 = inlined_call_operand.vmem [shape: f32[1,1024], index: 4, kind: input, shape index: {}]   ;;  %s2271_s5 = inlined_call_operand.vmem [shape: bf16[1024,32], index: 5, kind: input, shape index: {}]   ;;  %s2272_s6 = inlined_call_operand.vmem [shape: f32[1,32], index: 6, kind: input, shape index: {}]   ;;  %s2273_s7 = inlined_call_operand.vmem [shape: f32[8,16], index: 7, kind: input, shape index: {}]   ;;  %s2274_s8 = inlined_call_operand.hbm [shape: f32[8,48], index: 8, kind: output, shape index: {}]  }
   0x1   :  { %v32_v0 = vld [vmem:[%s2267_s1] sm:$0xff]  ;;  %v33_v2 = vld [vmem:[%s2267_s1 + $0x8] sm:$0xff]  ;;  %206 = vmatprep.mubr.bf16.mxu0 %v1751_v8  ;;  %247 = vmatprep.mubr.bf16.mxu1 %v1751_v8  ;;  %v34_v15 = vld [vmem:[%s2267_s1 + $0x10] sm:$0xff] }
   0x2   :  { %v36_v1 = vld [vmem:[%s2267_s1 + $0x20] sm:$0xff]  ;;  %v37_v4 = vld [vmem:[%s2267_s1 + $0x28] sm:$0xff]  ;;  %v38_v16 = vld [vmem:[%s2267_s1 + $0x30] sm:$0xff] }
   0x3   :  { %v1468_v3 = vcombine.high %v32_v0, %v36_v1  ;;  %v1467_v5 = vcombine.low %v32_v0, %v36_v1  ;;  %v40_v6 = vld [vmem:[%s2267_s1 + $0x40] sm:$0xff]  ;;  %v1470_v9 = vcombine.high %v33_v2, %v37_v4  ;;  %v1469_v10 = vcombine.low %v33_v2, %v37_v4  ;;  %v41_v12 = vld [vmem:[%s2267_s1 + $0x48] sm:$0xff]  ;;  %v35_v17 = vld [vmem:[%s2267_s1 + $0x18] sm:$0xff] }
   0x4   :  { %v44_v7 = vld [vmem:[%s2267_s1 + $0x60] sm:$0xff]  ;;  %v45_v13 = vld [vmem:[%s2267_s1 + $0x68] sm:$0xff]  ;;  %v39_v19 = vld [vmem:[%s2267_s1 + $0x38] sm:$0xff]  ;;  %v1472_v22 = vcombine.high %v34_v15, %v38_v16  ;;  %v1471_v28 = vcombine.low %v34_v15, %v38_v16 }
   0x5   :  { %v1476_v11 = vcombine.high %v40_v6, %v44_v7  ;;  %174 = vmatprep.subr.bf16.mxu0 %v1468_v3  ;;  %v1478_v14 = vcombine.high %v41_v12, %v45_v13  ;;  %215 = vmatprep.subr.bf16.mxu1 %v1470_v9  ;;  %v1475_v18 = vcombine.low %v40_v6, %v44_v7  ;;  %v42_v20 = vld [vmem:[%s2267_s1 + $0x50] sm:$0xff]  ;;  %v43_v24 = vld [vmem:[%s2267_s1 + $0x58] sm:$0xff]  ;;  %v31_v26 = vld [vmem:[%s2266_s0] sm:$0xf] }
   0x6   :  { %175 = vmatpush1.bf16.msra.mxu0 %v1467_v5  ;;  %216 = vmatpush1.bf16.msra.mxu1 %v1469_v10  ;;  %v1477_v21 = vcombine.low %v41_v12, %v45_v13  ;;  %v46_v23 = vld [vmem:[%s2267_s1 + $0x70] sm:$0xff]  ;;  %v47_v25 = vld [vmem:[%s2267_s1 + $0x78] sm:$0xff]  ;;  %v1474_v27 = vcombine.high %v35_v17, %v39_v19  ;;  %v1473_v29 = vcombine.low %v35_v17, %v39_v19 }
   0x7   :  { %176 = vmatprep.subr.bf16.mxu0 %v1476_v11  ;;  %217 = vmatprep.subr.bf16.mxu1 %v1478_v14  ;;  %v1480_v30 = vcombine.high %v42_v20, %v46_v23  ;;  %v1482_v31 = vcombine.high %v43_v24, %v47_v25  ;;  %v1479_v32 = vcombine.low %v42_v20, %v46_v23 }
   0x8   :  { %v1481_v33 = vcombine.low %v43_v24, %v47_v25 }
   0xa   :  { %177 = vmatpush1.bf16.msra.mxu0 %v1475_v18  ;;  %218 = vmatpush1.bf16.msra.mxu1 %v1477_v21 }
   0xb   :  { %256 = vmatprep.subr.bf16.mxu0 %v1472_v22  ;;  %297 = vmatprep.subr.bf16.mxu1 %v1474_v27 }
   0xd   :  { %1483 = vmatmul.mubr.msk.bf16.vlgmr.msra.gmra.mrb[0].mxu0 %vm170_vm0, %v31_v26  ;;  %1484 = vmatmul.mubr.msk.bf16.vlgmr.msra.gmra.mrb[0].mxu1 %vm170_vm0, %v31_v26 }
   0xe   :  { %257 = vmatpush1.bf16.msra.mxu0 %v1471_v28  ;;  %298 = vmatpush1.bf16.msra.mxu1 %v1473_v29 }
   0xf   :  { %258 = vmatprep.subr.bf16.mxu0 %v1480_v30  ;;  %299 = vmatprep.subr.bf16.mxu1 %v1482_v31 }
  0x10   :  { %288 = vmatprep.mubr.bf16.mxu0 %v1751_v8  ;;  %329 = vmatprep.mubr.bf16.mxu1 %v1751_v8 }
  0x12   :  { %259 = vmatpush1.bf16.msra.mxu0 %v1479_v32  ;;  %300 = vmatpush1.bf16.msra.mxu1 %v1481_v33 }
  0x15   :  { %1485 = vmatmul.mubr.msk.bf16.vlgmr.msra.gmra.mrb[4].mxu0 %vm170_vm0, %v31_v26  ;;  %1486 = vmatmul.mubr.msk.bf16.vlgmr.msra.gmra.mrb[4].mxu1 %vm170_vm0, %v31_v26 }
  0x16   :  { %13 = vsyncpa [#allocation3], 0  ;;  %v1645_v34 = vld [vmem:[%s2271_s5 + $0x40] sm:$0xff]   ;;  %v1649_v38 = vld [vmem:[%s2271_s5 + $0x48] sm:$0xff]   ;;  %v50_v4 = vlaneseq  ;;  %v1752_v18 = vmov 1966171168  }
  0x17   :  { %v1646_v35 = vld [vmem:[%s2271_s5 + $0xc0] sm:$0xff]   ;;  %1552 = vmatprep.subr.bf16.mxu0 %v1645_v34  ;;  %v1650_v39 = vld [vmem:[%s2271_s5 + $0xc8] sm:$0xff]   ;;  %v1653_v42 = vld [vmem:[%s2271_s5 + $0x50] sm:$0xff]   ;;  %v1995_v19 = vunpack.c.l.s4 %v1752_v18  ;;  %s1755_s24 = smov [#allocation2]   ;;  %vm1449_vm9 = vcmask 130048   ;;  %vm1451_vm10 = vcmask 392192  }
  0x18   :  { %v1647_v36 = vld [vmem:[%s2271_s5] sm:$0xff]   ;;  %1574 = vmatprep.subr.bf16.mxu1 %v1646_v35  ;;  %v1651_v40 = vld [vmem:[%s2271_s5 + $0x8] sm:$0xff]   ;;  %v1654_v43 = vld [vmem:[%s2271_s5 + $0xd0] sm:$0xff]   ;;  %v1958_v5 = vshrl.u32 %v50_v4, 7  ;;  %s1459_s25 = sshll.u32 %s1755_s24, 4  ;;  %s1460_s25 = int_to_ptr.vmem [resolvable:$true] %s1459_s25 }
  0x19   :  { %v1648_v37 = vld [vmem:[%s2271_s5 + $0x80] sm:$0xff]   ;;  %1553 = vmatpush3.bf16.msra.mxu0 %v1647_v36  ;;  %v1652_v41 = vld [vmem:[%s2271_s5 + $0x88] sm:$0xff]   ;;  %v1655_v44 = vld [vmem:[%s2271_s5 + $0x10] sm:$0xff]   ;;  %v513_v35 = vunpack.c.0.s8 %v1995_v19  ;;  %s1727_s26 = scalar_lea.vmem %s1460_s25, 128  ;;  %p1732_p1 = scmp.lt.s32.totalorder %s1460_s25, %s1460_s25 }
  0x1a   :  { %1575 = vmatpush3.bf16.msra.mxu1 %v1648_v37  ;;  %1554 = vmatprep.subr.bf16.mxu0 %v1649_v38  ;;  %v1656_v45 = vld [vmem:[%s2271_s5 + $0x90] sm:$0xff]   ;;  %v1657_v46 = vld [vmem:[%s2271_s5 + $0x58] sm:$0xff]   ;;  %v1661_v50 = vld [vmem:[%s2271_s5 + $0x60] sm:$0xff]   ;;  %v1961_v6 = vsub.s32 0, %v1958_v5  ;;  %v1969_v8 = vsub.s32 2, %v1958_v5  ;;  %v1972_v9 = vsub.s32 1, %v1958_v5  ;;  %p1728_p0 = scmp.ne.s32.totalorder %s1460_s25, %s1727_s26  ;;  %p1733_p2 = scmp.lt.s32.totalorder %s1727_s26, %s1727_s26 }
  0x1b   :  { %1576 = vmatprep.subr.bf16.mxu1 %v1650_v39  ;;  %v1658_v47 = vld [vmem:[%s2271_s5 + $0xd8] sm:$0xff]   ;;  %v1662_v51 = vld [vmem:[%s2271_s5 + $0xe0] sm:$0xff]   ;;  %v1665_v54 = vld [vmem:[%s2271_s5 + $0x68] sm:$0xff]   ;;  %v1975_v10 = vsub.s32 3, %v1958_v5  ;;  %v1980_v12 = vsub.s32 4, %v1958_v5  ;;  %v1983_v13 = vsub.s32 6, %v1958_v5 }
  0x1c   :  { %v1659_v48 = vld [vmem:[%s2271_s5 + $0x18] sm:$0xff]   ;;  %v1663_v52 = vld [vmem:[%s2271_s5 + $0x20] sm:$0xff]   ;;  %v1666_v55 = vld [vmem:[%s2271_s5 + $0xe8] sm:$0xff]   ;;  %v1990_v16 = vsub.s32 5, %v1958_v5  ;;  %v1993_v17 = vsub.s32 7, %v1958_v5  ;;  %p1734_p3 = por %p1733_p2, %p1732_p1 }
  0x1d   :  { %1555 = vmatpush3.bf16.msra.mxu0 %v1651_v40  ;;  %v1660_v49 = vld [vmem:[%s2271_s5 + $0x98] sm:$0xff]   ;;  %v1664_v53 = vld [vmem:[%s2271_s5 + $0xa0] sm:$0xff]   ;;  %v1667_v56 = vld [vmem:[%s2271_s5 + $0x28] sm:$0xff]  }
  0x1e   :  { %1577 = vmatpush3.bf16.msra.mxu1 %v1652_v41  ;;  %1556 = vmatprep.subr.bf16.mxu0 %v1653_v42  ;;  %v1668_v57 = vld [vmem:[%s2271_s5 + $0xa8] sm:$0xff]   ;;  %v1669_v58 = vld [vmem:[%s2271_s5 + $0x70] sm:$0xff]   ;;  %v1673_v62 = vld [vmem:[%s2271_s5 + $0x78] sm:$0xff]   ;;  %p1735_p4 = pnand %p1734_p3, %p1728_p0 }
  0x1f   :  { %1578 = vmatprep.subr.bf16.mxu1 %v1654_v43  ;;  %v1670_v59 = vld [vmem:[%s2271_s5 + $0xf0] sm:$0xff]   ;;  %v1674_v63 = vld [vmem:[%s2271_s5 + $0xf8] sm:$0xff]   ;;  %v1677_v2 = vld [vmem:[%s2271_s5 + $0x140] sm:$0xff]  }
  0x20   :  { %v1671_v60 = vld [vmem:[%s2271_s5 + $0x30] sm:$0xff]   ;;  %v1675_v0 = vld [vmem:[%s2271_s5 + $0x38] sm:$0xff]   ;;  %v1678_v3 = vld [vmem:[%s2271_s5 + $0x1c0] sm:$0xff]  }
  0x21   :  { %1557 = vmatpush3.bf16.msra.mxu0 %v1655_v44  ;;  %v1672_v61 = vld [vmem:[%s2271_s5 + $0xb0] sm:$0xff]   ;;  %v1676_v1 = vld [vmem:[%s2271_s5 + $0xb8] sm:$0xff]   ;;  %v1966_v7 = vld [vmem:[%s2268_s2] sm:$0xff] }
  0x22   :  { %1579 = vmatpush3.bf16.msra.mxu1 %v1656_v45  ;;  %1558 = vmatprep.subr.bf16.mxu0 %v1657_v46  ;;  %v53_v11 = vrot.slane %v1966_v7, %v1961_v6  ;;  %v61_v14 = vrot.slane %v1966_v7, %v1969_v8  ;;  %v57_v15 = vrot.slane %v1966_v7, %v1972_v9 }
  0x23   :  { %1580 = vmatprep.subr.bf16.mxu1 %v1658_v47  ;;  %v65_v20 = vrot.slane %v1966_v7, %v1975_v10  ;;  %v69_v25 = vrot.slane %v1966_v7, %v1980_v12  ;;  %v77_v26 = vrot.slane %v1966_v7, %v1983_v13  ;;  %v73_v31 = vrot.slane %v1966_v7, %v1990_v16 }
  0x24   :  { %v81_v32 = vrot.slane %v1966_v7, %v1993_v17 }
  0x25   :  { %1559 = vmatpush3.bf16.msra.mxu0 %v1659_v48 }
  0x26   :  { %1581 = vmatpush3.bf16.msra.mxu1 %v1660_v49  ;;  %1560 = vmatprep.subr.bf16.mxu0 %v1661_v50 }
  0x27   :  { %1582 = vmatprep.subr.bf16.mxu1 %v1662_v51 }
  0x29   :  { %1561 = vmatpush3.bf16.msra.mxu0 %v1663_v52 }
  0x2a   :  { %1583 = vmatpush3.bf16.msra.mxu1 %v1664_v53  ;;  %1562 = vmatprep.subr.bf16.mxu0 %v1665_v54 }
  0x2b   :  { %1584 = vmatprep.subr.bf16.mxu1 %v1666_v55 }
  0x2d   :  { %1563 = vmatpush3.bf16.msra.mxu0 %v1667_v56 }
  0x2e   :  { %1585 = vmatpush3.bf16.msra.mxu1 %v1668_v57  ;;  %1564 = vmatprep.subr.bf16.mxu0 %v1669_v58 }
  0x2f   :  { %1586 = vmatprep.subr.bf16.mxu1 %v1670_v59 }
  0x31   :  { %1565 = vmatpush3.bf16.msra.mxu0 %v1671_v60 }
  0x32   :  { %1587 = vmatpush3.bf16.msra.mxu1 %v1672_v61  ;;  %1566 = vmatprep.subr.bf16.mxu0 %v1673_v62 }
  0x33   :  { %1588 = vmatprep.subr.bf16.mxu1 %v1674_v63 }
  0x35   :  { %1567 = vmatpush3.bf16.msra.mxu0 %v1675_v0 }
  0x36   :  { %1589 = vmatpush3.bf16.msra.mxu1 %v1676_v1  ;;  %1596 = vmatprep.subr.bf16.mxu0 %v1677_v2 }
  0x37   :  { %1618 = vmatprep.subr.bf16.mxu1 %v1678_v3 }
  0xe0   :  { %v208_v21 = vpop.f32.mrb[0].mxu0  ;;  %v249_v23 = vpop.f32.mrb[0].mxu1 }
  0xe1   :  { %v1999_v22 = vadd.f32 %v208_v21, %v53_v11  ;;  %v210_v24 = vpop.f32.mrb[1].mxu0  ;;  %v2005_v27 = vadd.f32 %v249_v23, %v61_v14  ;;  %v251_v29 = vpop.f32.mrb[1].mxu1 }
  0xe2   :  { %v2007_v28 = vadd.f32 %v210_v24, %v57_v15  ;;  %v212_v30 = vpop.f32.mrb[2].mxu0  ;;  %v2017_v36 = vadd.f32 %v251_v29, %v65_v20  ;;  %v253_v37 = vpop.f32.mrb[2].mxu1 }
  0xe3   :  { %v338_v33 = vrot.slane %v1999_v22, 4  ;;  %v394_v34 = vmul.f32 %v1999_v22, %v1999_v22  ;;  %v213_v38 = vpop.f32.mrb[3].mxu0  ;;  %v350_v39 = vrot.slane %v2005_v27, 4  ;;  %v396_v40 = vmul.f32 %v2005_v27, %v2005_v27  ;;  %v254_v43 = vpop.f32.mrb[3].mxu1 }
  0xe4   :  { %v344_v41 = vrot.slane %v2007_v28, 4  ;;  %v395_v42 = vmul.f32 %v2007_v28, %v2007_v28  ;;  %v356_v46 = vrot.slane %v2017_v36, 4  ;;  %v397_v47 = vmul.f32 %v2017_v36, %v2017_v36 }
  0xe5   :  { %v339_v44 = vadd.f32 %v338_v33, %v1999_v22  ;;  %v402_v45 = vrot.slane %v394_v34, 4  ;;  %v351_v48 = vadd.f32 %v350_v39, %v2005_v27  ;;  %v414_v49 = vrot.slane %v396_v40, 4 }
  0xe6   :  { %v345_v50 = vadd.f32 %v344_v41, %v2007_v28  ;;  %v408_v51 = vrot.slane %v395_v42, 4  ;;  %v357_v54 = vadd.f32 %v356_v46, %v2017_v36  ;;  %v420_v55 = vrot.slane %v397_v47, 4 }
  0xe7   :  { %v340_v52 = vrot.slane %v339_v44, 2  ;;  %v403_v53 = vadd.f32 %v402_v45, %v394_v34  ;;  %v352_v56 = vrot.slane %v351_v48, 2  ;;  %v415_v57 = vadd.f32 %v414_v49, %v396_v40 }
  0xe8   :  { %v346_v58 = vrot.slane %v345_v50, 2  ;;  %v409_v59 = vadd.f32 %v408_v51, %v395_v42  ;;  %v290_v60 = vpop.f32.mrb[4].mxu0  ;;  %v358_v63 = vrot.slane %v357_v54, 2  ;;  %v421_v0 = vadd.f32 %v420_v55, %v397_v47  ;;  %v331_v1 = vpop.f32.mrb[4].mxu1 }
  0xe9   :  { %v341_v61 = vadd.f32 %v340_v52, %v339_v44  ;;  %v404_v62 = vrot.slane %v403_v53, 2  ;;  %v292_v2 = vpop.f32.mrb[5].mxu0  ;;  %v353_v3 = vadd.f32 %v352_v56, %v351_v48  ;;  %v416_v4 = vrot.slane %v415_v57, 2  ;;  %v2032_v15 = vpop.f32.mrb[5].mxu1 }
  0xea   :  { %v347_v11 = vadd.f32 %v346_v58, %v345_v50  ;;  %v410_v14 = vrot.slane %v409_v59, 2  ;;  %v294_v18 = vpop.f32.mrb[6].mxu0  ;;  %v359_v23 = vadd.f32 %v358_v63, %v357_v54  ;;  %v422_v24 = vrot.slane %v421_v0, 2  ;;  %v335_v29 = vpop.f32.mrb[6].mxu1 }
  0xeb   :  { %v342_v20 = vrot.slane %v341_v61, 1  ;;  %v405_v21 = vadd.f32 %v404_v62, %v403_v53  ;;  %v295_v30 = vpop.f32.mrb[7].mxu0  ;;  %v354_v33 = vrot.slane %v353_v3, 1  ;;  %v417_v34 = vadd.f32 %v416_v4, %v415_v57  ;;  %v336_v39 = vpop.f32.mrb[7].mxu1 }
  0xec   :  { %v348_v37 = vrot.slane %v347_v11, 1  ;;  %v411_v38 = vadd.f32 %v410_v14, %v409_v59  ;;  %v360_v42 = vrot.slane %v359_v23, 1  ;;  %v423_v43 = vadd.f32 %v422_v24, %v421_v0 }
  0xed   :  { %v343_v40 = vadd.f32 %v342_v20, %v341_v61  ;;  %v406_v41 = vrot.slane %v405_v21, 1  ;;  %v355_v44 = vadd.f32 %v354_v33, %v353_v3  ;;  %v418_v45 = vrot.slane %v417_v34, 1 }
  0xee   :  { %v349_v46 = vadd.f32 %v348_v37, %v347_v11  ;;  %v412_v47 = vrot.slane %v411_v38, 1  ;;  %v361_v50 = vadd.f32 %v360_v42, %v359_v23  ;;  %v424_v51 = vrot.slane %v423_v43, 1 }
  0xef   :  { %v2034_v48 = vmul.f32 0.125, %v343_v40  ;;  %v407_v49 = vadd.f32 %v406_v41, %v405_v21  ;;  %v2036_v52 = vmul.f32 0.125, %v355_v44  ;;  %v419_v53 = vadd.f32 %v418_v45, %v417_v34 }
  0xf0   :  { %v2038_v54 = vmul.f32 0.125, %v349_v46  ;;  %v413_v55 = vadd.f32 %v412_v47, %v411_v38  ;;  %v2042_v58 = vmul.f32 0.125, %v361_v50  ;;  %v425_v59 = vadd.f32 %v424_v51, %v423_v43 }
  0xf1   :  { %v450_v56 = vmul.f32 0.125, %v407_v49  ;;  %v458_v57 = vmul.f32 %v2034_v48, %v2034_v48  ;;  %v452_v61 = vmul.f32 0.125, %v419_v53  ;;  %v460_v62 = vmul.f32 %v2036_v52, %v2036_v52 }
  0xf2   :  { %v451_v63 = vmul.f32 0.125, %v413_v55  ;;  %v459_v0 = vmul.f32 %v2038_v54, %v2038_v54  ;;  %v453_v4 = vmul.f32 0.125, %v425_v59  ;;  %v461_v11 = vmul.f32 %v2042_v58, %v2042_v58 }
  0xf3   :  { %v466_v3 = vsub.f32 %v450_v56, %v458_v57  ;;  %v2053_v14 = vadd.f32 %v290_v60, %v69_v25  ;;  %v468_v18 = vsub.f32 %v452_v61, %v460_v62  ;;  %v2058_v21 = vadd.f32 %v331_v1, %v77_v26 }
  0xf4   :  { %v467_v20 = vsub.f32 %v451_v63, %v459_v0  ;;  %v2063_v23 = vadd.f32 %v292_v2, %v73_v31  ;;  %v469_v29 = vsub.f32 %v453_v4, %v461_v11  ;;  %v2081_v62 = vadd.f32 %v2032_v15, %v81_v32 }
  0xf5   :  { %v474_v24 = vmax.f32 %v466_v3, 0.0  ;;  %v362_v30 = vrot.slane %v2053_v14, 4  ;;  %v398_v25 = vmul.f32 %v2053_v14, %v2053_v14  ;;  %v476_v60 = vmax.f32 %v468_v18, 0.0 }
  0xf6   :  { %v475_v33 = vmax.f32 %v467_v20, 0.0  ;;  %v374_v34 = vrot.slane %v2058_v21, 4  ;;  %v400_v26 = vmul.f32 %v2058_v21, %v2058_v21  ;;  %v477_v37 = vmax.f32 %v469_v29, 0.0 }
  0xf7   :  { %v483_v1 = vadd.f32 1e-05, %v474_v24  ;;  %v363_v38 = vadd.f32 %v362_v30, %v2053_v14  ;;  %v426_v31 = vrot.slane %v398_v25, 4  ;;  %v485_v2 = vadd.f32 1e-05, %v476_v60 }
  0xf8   :  { %v484_v39 = vadd.f32 1e-05, %v475_v33  ;;  %v375_v40 = vadd.f32 %v374_v34, %v2058_v21  ;;  %v438_v41 = vrot.slane %v400_v26, 4  ;;  %v486_v42 = vadd.f32 1e-05, %v477_v37 }
  0xf9   :  { %1709 = vrsqrt.f32 %v483_v1  ;;  %v364_v43 = vrot.slane %v363_v38, 2  ;;  %v427_v44 = vadd.f32 %v426_v31, %v398_v25  ;;  %v368_v47 = vrot.slane %v2063_v23, 4 }
  0xfa   :  { %1711 = vrsqrt.f32 %v485_v2  ;;  %v376_v45 = vrot.slane %v375_v40, 2  ;;  %v439_v46 = vadd.f32 %v438_v41, %v400_v26  ;;  %v399_v51 = vmul.f32 %v2063_v23, %v2063_v23 }
  0xfb   :  { %1713 = vrsqrt.f32 %v484_v39  ;;  %v365_v49 = vadd.f32 %v364_v43, %v363_v38  ;;  %v428_v50 = vrot.slane %v427_v44, 2  ;;  %v369_v56 = vadd.f32 %v368_v47, %v2063_v23 }
  0xfc   :  { %1715 = vrsqrt.f32 %v486_v42  ;;  %v377_v53 = vadd.f32 %v376_v45, %v375_v40  ;;  %v440_v55 = vrot.slane %v439_v46, 2  ;;  %v432_v61 = vrot.slane %v399_v51, 4 }
  0xfd   :  { %v366_v57 = vrot.slane %v365_v49, 1  ;;  %v429_v59 = vadd.f32 %v428_v50, %v427_v44  ;;  %v2086_v63 = vsub.s32 %v513_v35, %v1958_v5  ;;  %v370_v4 = vrot.slane %v369_v56, 2 }
  0xfe   :  { %v378_v0 = vrot.slane %v377_v53, 1  ;;  %v441_v3 = vadd.f32 %v440_v55, %v439_v46  ;;  %v433_v20 = vadd.f32 %v432_v61, %v399_v51  ;;  %v380_v24 = vrot.slane %v2081_v62, 4 }
  0xff   :  { %v367_v11 = vadd.f32 %v366_v57, %v365_v49  ;;  %v430_v18 = vrot.slane %v429_v59, 1  ;;  %v371_v25 = vadd.f32 %v370_v4, %v369_v56  ;;  %v401_v7 = vmul.f32 %v2081_v62, %v2081_v62 }
 0x100   :  { %v379_v29 = vadd.f32 %v378_v0, %v377_v53  ;;  %v442_v30 = vrot.slane %v441_v3, 1  ;;  %v434_v19 = vrot.slane %v433_v20, 2  ;;  %v381_v5 = vadd.f32 %v380_v24, %v2081_v62 }
 0x101   :  { %v2091_v32 = vmul.f32 0.125, %v367_v11  ;;  %v431_v15 = vadd.f32 %v430_v18, %v429_v59  ;;  %v372_v33 = vrot.slane %v371_v25, 1  ;;  %v444_v34 = vrot.slane %v401_v7, 4 }
 0x102   :  { %v2094_v35 = vmul.f32 0.125, %v379_v29  ;;  %v443_v60 = vadd.f32 %v442_v30, %v441_v3  ;;  %v435_v38 = vadd.f32 %v434_v19, %v433_v20  ;;  %v382_v31 = vrot.slane %v381_v5, 2 }
 0x103   :  { %v1710_v26 = vpop.eup %1709  ;;  %v454_v1 = vmul.f32 0.125, %v431_v15  ;;  %v462_v37 = vmul.f32 %v2091_v32, %v2091_v32  ;;  %v373_v41 = vadd.f32 %v372_v33, %v371_v25  ;;  %v445_v42 = vadd.f32 %v444_v34, %v401_v7 }
 0x104   :  { %v1712_v2 = vpop.eup %1711  ;;  %v456_v39 = vmul.f32 0.125, %v443_v60  ;;  %v464_v40 = vmul.f32 %v2094_v35, %v2094_v35  ;;  %v436_v45 = vrot.slane %v435_v38, 1  ;;  %v383_v46 = vadd.f32 %v382_v31, %v381_v5 }
 0x105   :  { %v1714_v43 = vpop.eup %1713  ;;  %v470_v44 = vsub.f32 %v454_v1, %v462_v37  ;;  %v391_v50 = vmul.f32 0.125, %v373_v41  ;;  %v446_v51 = vrot.slane %v445_v42, 2 }
 0x106   :  { %v1716_v47 = vpop.eup %1715  ;;  %v507_v49 = vcombine.low %v1710_v26, %v1714_v43  ;;  %v437_v56 = vadd.f32 %v436_v45, %v435_v38  ;;  %v384_v57 = vrot.slane %v383_v46, 1  ;;  %v472_v61 = vsub.f32 %v456_v39, %v464_v40 }
 0x107   :  { %v508_v53 = vcombine.low %v1712_v2, %v1716_v47  ;;  %v478_v55 = vmax.f32 %v470_v44, 0.0  ;;  %v463_v0 = vmul.f32 %v391_v50, %v391_v50  ;;  %v447_v3 = vadd.f32 %v446_v51, %v445_v42  ;;  %v482_v47 = vld [vmem:[%s2269_s3] sm:$0xff] }
 0x108   :  { %v517_v59 = vrot.slane %v507_v49, %v2086_v63  ;;  %v455_v11 = vmul.f32 0.125, %v437_v56  ;;  %v385_v18 = vadd.f32 %v384_v57, %v383_v46  ;;  %v480_v7 = vmax.f32 %v472_v61, 0.0 }
 0x109   :  { %v524_v4 = vrot.slane %v508_v53, %v2086_v63  ;;  %v448_v20 = vrot.slane %v447_v3, 1  ;;  %v487_v29 = vadd.f32 1e-05, %v478_v55 }
 0x10a   :  { %v471_v30 = vsub.f32 %v455_v11, %v463_v0  ;;  %v393_v25 = vmul.f32 0.125, %v385_v18  ;;  %v489_v34 = vadd.f32 1e-05, %v480_v7 }
 0x10b   :  { %v539_v24 = vcombine.low %v517_v59, %v524_v4  ;;  %v449_v15 = vadd.f32 %v448_v20, %v447_v3  ;;  %1717 = vrsqrt.f32 %v487_v29 }
 0x10c   :  { %v479_v19 = vmax.f32 %v471_v30, 0.0  ;;  %v465_v5 = vmul.f32 %v393_v25, %v393_v25 }
 0x10d   :  { %v457_v60 = vmul.f32 0.125, %v449_v15  ;;  %v547_v45 = vrot.slane %v539_v24, %v2086_v63 }
 0x10e   :  { %v488_v33 = vadd.f32 1e-05, %v479_v19 }
 0x10f   :  { %v473_v26 = vsub.f32 %v457_v60, %v465_v5 }
 0x110   :  { %1719 = vrsqrt.f32 %v488_v33 }
 0x111   :  { %v481_v1 = vmax.f32 %v473_v26, 0.0  ;;  %1721 = vrsqrt.f32 %v489_v34 }
 0x113   :  { %v490_v37 = vadd.f32 1e-05, %v481_v1  ;;  %v558_v1 = vld [vmem:[%s2270_s4] sm:$0xff] }
 0x115   :  { %1723 = vrsqrt.f32 %v490_v37  ;;  %v1718_v38 = vpop.eup %1717 }
 0x11a   :  { %v1720_v31 = vpop.eup %1719 }
 0x11b   :  { %v509_v2 = vcombine.low %v1718_v38, %v1720_v31  ;;  %v1722_v39 = vpop.eup %1721 }
 0x11d   :  { %v531_v41 = vrot.slane %v509_v2, %v2086_v63 }
 0x11f   :  { %v1724_v40 = vpop.eup %1723 }
 0x120   :  { %v510_v42 = vcombine.low %v1722_v39, %v1724_v40 }
 0x122   :  { %v538_v43 = vrot.slane %v510_v42, %v2086_v63 }
 0x124   :  { %v540_v44 = vcombine.low %v531_v41, %v538_v43 }
 0x126   :  { %v554_v46 = vrot.slane %v540_v44, %v2086_v63 }
 0x128   :  { %v555_v49 = vcombine.low %v547_v45, %v554_v46 }
 0x12a   :  { %v557_v51 = vmul.f32 %v555_v49, %v482_v47 }
 0x12c   :  { %v579_v53 = vrot.slane %v557_v51, %v1980_v12  ;;  %v583_v55 = vrot.slane %v557_v51, %v1990_v16  ;;  %v587_v56 = vrot.slane %v557_v51, %v1983_v13  ;;  %v591_v57 = vrot.slane %v557_v51, %v1993_v17 }
 0x12d   :  { %v563_v59 = vrot.slane %v557_v51, %v1961_v6  ;;  %v567_v61 = vrot.slane %v557_v51, %v1972_v9  ;;  %v571_v0 = vrot.slane %v557_v51, %v1969_v8  ;;  %v575_v3 = vrot.slane %v557_v51, %v1975_v10 }
 0x12e   :  { %v604_v4 = vmul.f32 %v579_v53, %v2091_v32  ;;  %v605_v11 = vmul.f32 %v583_v55, %v391_v50  ;;  %v606_v18 = vmul.f32 %v587_v56, %v2094_v35  ;;  %v607_v20 = vmul.f32 %v591_v57, %v393_v25 }
 0x12f   :  { %v674_v24 = vmul.f32 %v591_v57, %v2081_v62  ;;  %v600_v29 = vmul.f32 %v563_v59, %v2034_v48  ;;  %v601_v30 = vmul.f32 %v567_v61, %v2038_v54  ;;  %v602_v7 = vmul.f32 %v571_v0, %v2036_v52  ;;  %v1680_v57 = vld [vmem:[%s2271_s5 + $0x180] sm:$0xff]  }
 0x130   :  { %v618_v15 = vcombine.low %v604_v4, %v605_v11  ;;  %v619_v19 = vcombine.low %v606_v18, %v607_v20  ;;  %v603_v5 = vmul.f32 %v575_v3, %v2042_v58  ;;  %v668_v60 = vmul.f32 %v567_v61, %v2007_v28  ;;  %v1682_v11 = vld [vmem:[%s2271_s5 + $0x1c8] sm:$0xff]  }
 0x131   :  { %v616_v33 = vcombine.low %v600_v29, %v601_v30  ;;  %v670_v32 = vmul.f32 %v575_v3, %v2017_v36  ;;  %v667_v35 = vmul.f32 %v563_v59, %v1999_v22  ;;  %v669_v50 = vmul.f32 %v571_v0, %v2005_v27  ;;  %v1681_v3 = vld [vmem:[%s2271_s5 + $0x148] sm:$0xff]  }
 0x132   :  { %v640_v62 = vrot.slane %v618_v15, %v2086_v63  ;;  %v647_v48 = vrot.slane %v619_v19, %v2086_v63  ;;  %v617_v54 = vcombine.low %v602_v7, %v603_v5  ;;  %v672_v52 = vmul.f32 %v583_v55, %v2063_v23  ;;  %v1684_v29 = vld [vmem:[%s2271_s5 + $0x188] sm:$0xff]   ;;  %v1685_v7 = vld [vmem:[%s2271_s5 + $0x150] sm:$0xff]  }
 0x133   :  { %v626_v25 = vrot.slane %v616_v33, %v2086_v63  ;;  %v671_v58 = vmul.f32 %v579_v53, %v2053_v14  ;;  %v673_v28 = vmul.f32 %v587_v56, %v2058_v21  ;;  %v1679_v56 = vld [vmem:[%s2271_s5 + $0x100] sm:$0xff]   ;;  %v1686_v15 = vld [vmem:[%s2271_s5 + $0x1d0] sm:$0xff]   ;;  %v1690_v33 = vld [vmem:[%s2271_s5 + $0x1d8] sm:$0xff]  }
 0x134   :  { %v649_v34 = vcombine.low %v640_v62, %v647_v48  ;;  %v633_v36 = vrot.slane %v617_v54, %v2086_v63  ;;  %v1687_v19 = vld [vmem:[%s2271_s5 + $0x110] sm:$0xff]   ;;  %v1694_v62 = vld [vmem:[%s2271_s5 + $0x1e0] sm:$0xff]  }
 0x135   :  { %v1688_v5 = vld [vmem:[%s2271_s5 + $0x190] sm:$0xff]   ;;  %v1695_v48 = vld [vmem:[%s2271_s5 + $0x120] sm:$0xff]  }
 0x136   :  { %v663_v22 = vrot.slane %v649_v34, %v2086_v63  ;;  %v648_v26 = vcombine.low %v626_v25, %v633_v36  ;;  %v1696_v54 = vld [vmem:[%s2271_s5 + $0x1a0] sm:$0xff]   ;;  %v1698_v25 = vld [vmem:[%s2271_s5 + $0x1e8] sm:$0xff]   ;;  %v1701_v34 = vld [vmem:[%s2271_s5 + $0x170] sm:$0xff]  }
 0x137   :  { %v1702_v36 = vld [vmem:[%s2271_s5 + $0x1f0] sm:$0xff]  }
 0x138   :  { %v656_v27 = vrot.slane %v648_v26, %v2086_v63  ;;  %v1704_v26 = vld [vmem:[%s2271_s5 + $0x1b0] sm:$0xff]  }
 0x13a   :  { %v664_v37 = vcombine.low %v656_v27, %v663_v22  ;;  %v1703_v22 = vld [vmem:[%s2271_s5 + $0x130] sm:$0xff]   ;;  %v1705_v27 = vld [vmem:[%s2271_s5 + $0x178] sm:$0xff]  }
 0x13c   :  { %v666_v23 = vsub.f32 %v558_v1, %v664_v37  ;;  %v1706_v1 = vld [vmem:[%s2271_s5 + $0x1f8] sm:$0xff]  }
 0x13e   :  { %v683_v38 = vrot.slane %v666_v23, %v1972_v9  ;;  %v691_v14 = vrot.slane %v666_v23, %v1975_v10  ;;  %v679_v21 = vrot.slane %v666_v23, %v1961_v6  ;;  %v687_v31 = vrot.slane %v666_v23, %v1969_v8 }
 0x13f   :  { %v699_v2 = vrot.slane %v666_v23, %v1990_v16  ;;  %v707_v39 = vrot.slane %v666_v23, %v1993_v17  ;;  %v695_v63 = vrot.slane %v666_v23, %v1980_v12  ;;  %v703_v40 = vrot.slane %v666_v23, %v1983_v13 }
 0x140   :  { %v717_v41 = vadd.f32 %v683_v38, %v668_v60  ;;  %v719_v42 = vadd.f32 %v691_v14, %v670_v32  ;;  %v716_v43 = vadd.f32 %v679_v21, %v667_v35  ;;  %v718_v44 = vadd.f32 %v687_v31, %v669_v50  ;;  %v1689_v60 = vld [vmem:[%s2271_s5 + $0x158] sm:$0xff]   ;;  %v1693_v50 = vld [vmem:[%s2271_s5 + $0x160] sm:$0xff]  }
 0x141   :  { %v721_v45 = vadd.f32 %v699_v2, %v672_v52  ;;  %v723_v9 = vadd.f32 %v707_v39, %v674_v24  ;;  %v2148_v46 = vadd.f32 %v695_v63, %v671_v58  ;;  %v2150_v10 = vadd.f32 %v703_v40, %v673_v28  ;;  %v1683_v24 = vld [vmem:[%s2271_s5 + $0x108] sm:$0xff]   ;;  %v1691_v32 = vld [vmem:[%s2271_s5 + $0x118] sm:$0xff]  }
 0x142   :  { %vm725_vm1 = vcmp.gt.f32.partialorder %v717_v41, 0.0  ;;  %v733_v6 = vmul.f32 0.2, %v717_v41  ;;  %vm727_vm2 = vcmp.gt.f32.partialorder %v719_v42, 0.0  ;;  %v735_v8 = vmul.f32 0.2, %v719_v42 }
 0x143   :  { %vm724_vm3 = vcmp.gt.f32.partialorder %v716_v43, 0.0  ;;  %v732_v16 = vmul.f32 0.2, %v716_v43  ;;  %vm726_vm4 = vcmp.gt.f32.partialorder %v718_v44, 0.0  ;;  %v734_v12 = vmul.f32 0.2, %v718_v44 }
 0x144   :  { %v741_v17 = vsel %vm725_vm1, %v717_v41, %v733_v6  ;;  %v743_v13 = vsel %vm727_vm2, %v719_v42, %v735_v8  ;;  %vm729_vm5 = vcmp.gt.f32.partialorder %v721_v45, 0.0  ;;  %v737_v47 = vmul.f32 0.2, %v721_v45  ;;  %v1692_v35 = vld [vmem:[%s2271_s5 + $0x198] sm:$0xff]   ;;  %v1697_v52 = vld [vmem:[%s2271_s5 + $0x168] sm:$0xff]  }
 0x145   :  { %v749_v49 = vpack.c.bf16 %v741_v17, %v741_v17  ;;  %v751_v51 = vpack.c.bf16 %v743_v13, %v743_v13  ;;  %v740_v53 = vsel %vm724_vm3, %v716_v43, %v732_v16  ;;  %v742_v55 = vsel %vm726_vm4, %v718_v44, %v734_v12  ;;  %v1699_v58 = vld [vmem:[%s2271_s5 + $0x128] sm:$0xff]   ;;  %v1707_v38 = vld [vmem:[%s2271_s5 + $0x138] sm:$0xff]   ;;  %v1487_v41 = vld [vmem:[%s2272_s6] ss:$0 sm:$0xff]  ;;  %s1754_s6 = smov 16  }
 0x146   :  { %v748_v59 = vpack.c.bf16 %v740_v53, %v740_v53  ;;  %v750_v61 = vpack.c.bf16 %v742_v55, %v742_v55  ;;  %v745_v0 = vsel %vm729_vm5, %v721_v45, %v737_v47  ;;  %vm731_vm6 = vcmp.gt.f32.partialorder %v723_v9, 0.0  ;;  %v1700_v28 = vld [vmem:[%s2271_s5 + $0x1a8] sm:$0xff]   ;;  %v1708_v14 = vld [vmem:[%s2271_s5 + $0x1b8] sm:$0xff]   ;;  %s1753_s5 = smov 112  }
 0x147   :  { %1307 = vmatprep.mubr.bf16.mxu0 %v749_v49  ;;  %1347 = vmatprep.mubr.bf16.mxu1 %v751_v51  ;;  %v739_v4 = vmul.f32 0.2, %v723_v9  ;;  %v753_v18 = vpack.c.bf16 %v745_v0, %v745_v0  ;;  %v736_v37 = vmul.f32 0.2, %v2148_v46  ;;  %v738_v23 = vmul.f32 0.2, %v2150_v10 }
 0x148   :  { %1308 = vmatmul.mubr.bf16.vlgmr.msra.gmra.mrb[8].mxu0 %v748_v59  ;;  %1348 = vmatmul.mubr.bf16.vlgmr.msra.gmra.mrb[8].mxu1 %v750_v61  ;;  %vm728_vm7 = vcmp.gt.f32.partialorder %v2148_v46, 0.0  ;;  %vm730_vm8 = vcmp.gt.f32.partialorder %v2150_v10, 0.0 }
 0x149   :  { %1597 = vmatpush3.bf16.msra.mxu0 %v1679_v56  ;;  %1619 = vmatpush3.bf16.msra.mxu1 %v1680_v57  ;;  %v747_v20 = vsel %vm731_vm6, %v723_v9, %v739_v4  ;;  %v744_v21 = vsel %vm728_vm7, %v2148_v46, %v736_v37  ;;  %v746_v31 = vsel %vm730_vm8, %v2150_v10, %v738_v23 }
 0x14a   :  { %1387 = vmatprep.mubr.bf16.mxu0 %v753_v18  ;;  %v755_v30 = vpack.c.bf16 %v747_v20, %v747_v20  ;;  %1598 = vmatprep.subr.bf16.mxu0 %v1681_v3  ;;  %v752_v2 = vpack.c.bf16 %v744_v21, %v744_v21  ;;  %v754_v39 = vpack.c.bf16 %v746_v31, %v746_v31 }
 0x14b   :  { %1620 = vmatprep.subr.bf16.mxu1 %v1682_v11  ;;  %v1435_v11 = vld [vmem:[%s2273_s7] sm:$0xff] }
 0x14c   :  { %1427 = vmatprep.mubr.bf16.mxu1 %v755_v30 }
 0x14d   :  { %1599 = vmatpush3.bf16.msra.mxu0 %v1683_v24  ;;  %1621 = vmatpush3.bf16.msra.mxu1 %v1684_v29 }
 0x14e   :  { %1600 = vmatprep.subr.bf16.mxu0 %v1685_v7  ;;  %1622 = vmatprep.subr.bf16.mxu1 %v1686_v15 }
 0x151   :  { %1601 = vmatpush3.bf16.msra.mxu0 %v1687_v19  ;;  %1623 = vmatpush3.bf16.msra.mxu1 %v1688_v5 }
 0x152   :  { %1602 = vmatprep.subr.bf16.mxu0 %v1689_v60  ;;  %1624 = vmatprep.subr.bf16.mxu1 %v1690_v33 }
 0x155   :  { %1603 = vmatpush3.bf16.msra.mxu0 %v1691_v32  ;;  %1625 = vmatpush3.bf16.msra.mxu1 %v1692_v35 }
 0x156   :  { %1604 = vmatprep.subr.bf16.mxu0 %v1693_v50  ;;  %1626 = vmatprep.subr.bf16.mxu1 %v1694_v62 }
 0x159   :  { %1605 = vmatpush3.bf16.msra.mxu0 %v1695_v48  ;;  %1627 = vmatpush3.bf16.msra.mxu1 %v1696_v54 }
 0x15a   :  { %1606 = vmatprep.subr.bf16.mxu0 %v1697_v52  ;;  %1628 = vmatprep.subr.bf16.mxu1 %v1698_v25 }
 0x15d   :  { %1607 = vmatpush3.bf16.msra.mxu0 %v1699_v58  ;;  %1629 = vmatpush3.bf16.msra.mxu1 %v1700_v28 }
 0x15e   :  { %1608 = vmatprep.subr.bf16.mxu0 %v1701_v34  ;;  %1630 = vmatprep.subr.bf16.mxu1 %v1702_v36 }
 0x161   :  { %1609 = vmatpush3.bf16.msra.mxu0 %v1703_v22  ;;  %1631 = vmatpush3.bf16.msra.mxu1 %v1704_v26 }
 0x162   :  { %1610 = vmatprep.subr.bf16.mxu0 %v1705_v27  ;;  %1632 = vmatprep.subr.bf16.mxu1 %v1706_v1 }
 0x165   :  { %1611 = vmatpush3.bf16.msra.mxu0 %v1707_v38  ;;  %1633 = vmatpush3.bf16.msra.mxu1 %v1708_v14 }
 0x168   :  { %1388 = vmatmul.mubr.bf16.vlgmr.msra.gmra.mrb[12].mxu0 %v752_v2  ;;  %1428 = vmatmul.mubr.bf16.vlgmr.msra.gmra.mrb[12].mxu1 %v754_v39 }
 0x21b   :  { %v1568_v63 = vpop.f32.mrb[8].mxu0  ;;  %v1590_v40 = vpop.f32.mrb[8].mxu1 }
 0x21c   :  { %v1569_v42 = vpop.f32.mrb[9].mxu0  ;;  %v1591_v43 = vpop.f32.mrb[9].mxu1 }
 0x21d   :  { %v1570_v44 = vadd.f32 %v1569_v42, %v1568_v63  ;;  %v1592_v45 = vadd.f32 %v1591_v43, %v1590_v40  ;;  %v1571_v9 = vpop.f32.mrb[10].mxu0  ;;  %v1593_v46 = vpop.f32.mrb[10].mxu1 }
 0x21e   :  { %v1572_v6 = vpop.f32.mrb[11].mxu0  ;;  %v1594_v10 = vpop.f32.mrb[11].mxu1 }
 0x21f   :  { %v1310_v8 = vadd.f32 %v1570_v44, %v1487_v41 }
 0x221   :  { %v1350_v16 = vadd.f32 %v1592_v45, %v1310_v8 }
 0x23b   :  { %v1612_v12 = vpop.f32.mrb[12].mxu0  ;;  %v1634_v17 = vpop.f32.mrb[12].mxu1 }
 0x23c   :  { %v1613_v13 = vpop.f32.mrb[13].mxu0  ;;  %v1635_v47 = vpop.f32.mrb[13].mxu1 }
 0x23d   :  { %v1614_v49 = vadd.f32 %v1613_v13, %v1612_v12  ;;  %v1636_v51 = vadd.f32 %v1635_v47, %v1634_v17  ;;  %v1615_v53 = vpop.f32.mrb[14].mxu0  ;;  %v1637_v55 = vpop.f32.mrb[14].mxu1 }
 0x23e   :  { %v1616_v56 = vpop.f32.mrb[15].mxu0  ;;  %v1638_v57 = vpop.f32.mrb[15].mxu1 }
 0x23f   :  { %v1390_v59 = vadd.f32 %v1614_v49, %v1350_v16 }
 0x241   :  { %v1430_v61 = vadd.f32 %v1636_v51, %v1390_v59 }
 0x243   :  { %v1436_v0 = vmul.f32 0.5, %v1430_v61 }
 0x245   :  { %v1437_v3 = vmul.f32 1.442695, %v1436_v0 }
 0x247   :  { %1725 = vpow2.f32 %v1437_v3 }
 0x251   :  { %v1726_v4 = vpop.eup %1725 }
 0x252   :  { %1440 = vrot.lane.b32.xlu0 %v1726_v4, %s1753_s5 }
 0x256   :  { %1446 = vrot.lane.b32.xlu0 %v1430_v61, %s1754_s6 }
 0x2c4   :  { %v1441_v18 = vpop.permute.xlu0 %1440 }
 0x2c5   :  { %v1443_v20 = vmul.f32 %v1441_v18, %v1435_v11 }
 0x2c7   :  { %v1444_v24 = vadd.f32 %v1443_v20, %v1430_v61 }
 0x2c8   :  { %v1447_v29 = vpop.permute.xlu0 %1446 }
 0x2c9   :  { %v1450_v30 = vsel %vm1449_vm9, %v1444_v24, %v1447_v29 }
 0x2ca   :  { %1452 = vst.msk [vmem:[#allocation2] sm:$0xff] %vm1451_vm10, %v1450_v30 }
 0x2cb   :  { %1738 = shalt.err (!%p1735_p4)
}
 0x2cc   :  { %s1739_s28 = scalar_lea.hbm %s2274_s8, 128 }
 0x2cd   :  { %p1740_p5 = scmp.ne.s32.totalorder %s2274_s8, %s1739_s28  ;;  %p1743_p6 = scmp.lt.u32.totalorder %s1739_s28, %s2274_s8 }
 0x2cf   :  { %p1745_p7 = pnand %p1743_p6, %p1740_p5 }
 0x2d1   :  { %1748 = shalt.err (!%p1745_p7)
}
 0x2d2   :  { %1462 = dma.vmem_to_hbm [thread:$0]  %s1460_s25, 128, %s2274_s8, [#allocation3]  }
 0x2d3   :  { %1749 = dma.done.wait [#allocation3], 128  }
 0x2d4   :  { %1750 = vsyncadd [#allocation3], 4294967168 }
 0x2d5   :  { %1466 = vsyncpa [#allocation3], 1 }

</bundles_post_ra>
